<compile_context>
chip_gen: v5e
topology: v5e:2x2
jax: 0.10.0
libtpu: 0.0.40
codegen_flags: <defaults>
</compile_context>

<pallas_src>
import functools

import jax
import jax.numpy as jnp
from jax.experimental import pallas as pl
from jax.experimental.pallas import tpu as pltpu


def _round_up(x, m):
    return (x + m - 1) // m * m


# ---------------------------------------------------------------------------
# Kernel
# ---------------------------------------------------------------------------
def _make_kernel(hdim, H):
    """hdim: real hidden width; H: lane-padded hidden width (multiple of 128)."""
    inv_h = 1.0 / float(hdim)   # AvgL1Norm mean uses the REAL hdim

    def kernel(sa_ref, zsa_ref, zs_ref,
               w0_ref, b0_ref,
               w1ha_ref, w1hb_ref, w1zsa_ref, w1zs_ref, b1_ref,
               w2a_ref, w2b_ref, b2_ref,
               w3a_ref, w3b_ref, b3a_ref, b3b_ref,
               out_ref):
        bf = jnp.bfloat16
        sa = sa_ref[...].astype(bf)
        za = zsa_ref[...].astype(bf)
        zz = zs_ref[...].astype(bf)

        # Layer 0: one dot, both branches fused along N -> (TB, 2H).
        h0 = (jnp.dot(sa, w0_ref[...], preferred_element_type=jnp.float32)
              + b0_ref[...])

        def avg_l1(x):
            # Padded columns are exactly zero, so the abs-sum over H equals the
            # sum over the real hdim columns; divide by the REAL hdim.
            mean = jnp.sum(jnp.abs(x), axis=-1, keepdims=True) * inv_h
            inv = 1.0 / jnp.maximum(mean, 1e-8)   # (TB,1): exact, negligible
            return x * inv

        # Per-branch halves; no concatenate (halves stay separate from here on).
        h0a = avg_l1(h0[:, :H])
        h0b = avg_l1(h0[:, H:])

        def elu(x):  # f32 elementwise (safe on v5e: no bf16 VPU/EUP there)
            return jnp.where(x > 0, x, jnp.exp(x) - 1.0)

        # Embedding contribution (zsa / zs), both branches fused along N.
        emb = (jnp.dot(za, w1zsa_ref[...], preferred_element_type=jnp.float32)
               + jnp.dot(zz, w1zs_ref[...], preferred_element_type=jnp.float32)
               + b1_ref[...])

        # Layer 1: per-branch dense (H,H) hidden matmuls (no structural zeros).
        h1a = elu(jnp.dot(h0a.astype(bf), w1ha_ref[...],
                          preferred_element_type=jnp.float32) + emb[:, :H])
        h1b = elu(jnp.dot(h0b.astype(bf), w1hb_ref[...],
                          preferred_element_type=jnp.float32) + emb[:, H:])

        # Layer 2: per-branch dense (H,H).
        h2a = elu(jnp.dot(h1a.astype(bf), w2a_ref[...],
                          preferred_element_type=jnp.float32) + b2_ref[:, :H])
        h2b = elu(jnp.dot(h1b.astype(bf), w2b_ref[...],
                          preferred_element_type=jnp.float32) + b2_ref[:, H:])

        # Heads: (H, 128) lane slabs with the real q in lane 0; fold the min.
        q1 = (jnp.dot(h2a.astype(bf), w3a_ref[...],
                      preferred_element_type=jnp.float32) + b3a_ref[...])
        q2 = (jnp.dot(h2b.astype(bf), w3b_ref[...],
                      preferred_element_type=jnp.float32) + b3b_ref[...])
        out_ref[...] = jnp.minimum(q1, q2).astype(out_ref.dtype)  # lane-dense

    return kernel


# ---------------------------------------------------------------------------
# Wrapper
# ---------------------------------------------------------------------------
@functools.partial(jax.jit, static_argnames=("hdim",))
def q_critic_forward(state, action, zsa, zs, packed, hdim):
    B = state.shape[0]
    # Tiny wrapper-side concat so layer 0 is a single K=(sd+ad) dot.
    sa = jnp.concatenate([state, action], axis=1)
    in0 = sa.shape[1]
    zd = zsa.shape[1]
    H = packed["b0"].shape[-1] // 2
    NQ = packed["b3a"].shape[-1]

    # >= 2 grid steps for realistic batches (B >= 16) so v7x megacore can shard
    # the batch; cap at 512 rows so the per-step working set fits v7x's 64 MiB
    # VMEM.  (v5e/v6e with 128 MiB could use 1024-row tiles for very large B;
    # kept at 512 for portability.)
    TILE_B = min(512, _round_up(pl.cdiv(B, 2), 8))
    grid = (pl.cdiv(B, TILE_B),)

    def batch_spec(feat):
        return pl.BlockSpec((TILE_B, feat), lambda i: (i, 0))

    def const_spec(arr):  # weights/biases stay VMEM-resident across grid steps
        return pl.BlockSpec(arr.shape, lambda i: (0, 0))

    names = ("w0", "b0", "w1ha", "w1hb", "w1zsa", "w1zs", "b1",
             "w2a", "w2b", "b2", "w3a", "w3b", "b3a", "b3b")
    weights = [packed[n] for n in names]

    head = pl.pallas_call(
        _make_kernel(hdim, H),
        out_shape=jax.ShapeDtypeStruct((B, NQ), jnp.float32),
        grid=grid,
        in_specs=([batch_spec(in0), batch_spec(zd), batch_spec(zd)]
                  + [const_spec(w) for w in weights]),
        out_specs=batch_spec(NQ),
        compiler_params=pltpu.CompilerParams(
            dimension_semantics=("parallel",),        # megacore-shard batch
            vmem_limit_bytes=32 * 1024 * 1024),       # v5e default is only 16MiB
    )(sa, zsa, zs, *weights)

    # min(q1, q2) was computed inside the kernel; lane 0 holds the result.
    return head[:, 0:1]


# ---------------------------------------------------------------------------
# Parameter construction / packing
# ---------------------------------------------------------------------------
def make_params(key, state_dim, action_dim, zs_dim, hdim):
    """PyTorch-Linear-shaped params; weights stored pre-transposed (in, out)."""
    dims = {
        "q01": (state_dim + action_dim, hdim),
        "q1": (2 * zs_dim + hdim, hdim),
        "q2": (hdim, hdim),
        "q3": (hdim, 1),
        "q02": (state_dim + action_dim, hdim),
        "q4": (2 * zs_dim + hdim, hdim),
        "q5": (hdim, hdim),
        "q6": (hdim, 1),
    }
    names = {"q01": ("w01", "b01"), "q1": ("w1", "b1"), "q2": ("w2", "b2"),
             "q3": ("w3", "b3"), "q02": ("w02", "b02"), "q4": ("w4", "b4"),
             "q5": ("w5", "b5"), "q6": ("w6", "b6")}
    params = {}
    for lname, (fan_in, fan_out) in dims.items():
        key, kw, kb = jax.random.split(key, 3)
        bound = 1.0 / jnp.sqrt(fan_in)
        wname, bname = names[lname]
        params[wname] = jax.random.uniform(
            kw, (fan_in, fan_out), jnp.float32, -bound, bound)
        params[bname] = jax.random.uniform(
            kb, (1, fan_out), jnp.float32, -bound, bound)
    return params


def pack_params(params, state_dim, action_dim, zs_dim, hdim):
    """Pack both branches, zero-pad hidden width to H=round_up(hdim,128).

    Done ONCE at init; matmul weights stored as bf16, biases as f32.
    Layer-1/2 hidden weights are per-branch dense (H,H) (no block-diag zeros).
    """
    H = _round_up(hdim, 128)
    NQ = 128
    sd, ad, zd = state_dim, action_dim, zs_dim
    in0 = sd + ad

    w1, w4 = params["w1"], params["w4"]        # (hdim + 2*zd, hdim)
    assert w1.shape[0] == hdim + 2 * zd and w4.shape[0] == hdim + 2 * zd

    bf = jnp.bfloat16
    z = lambda shape: jnp.zeros(shape, jnp.float32)

    # Layer 0: single (sd+ad, 2H) weight, branches fused along N.
    w0 = (z((in0, 2 * H))
          .at[:, :hdim].set(params["w01"])
          .at[:, H:H + hdim].set(params["w02"]))
    b0 = (z((1, 2 * H))
          .at[:, :hdim].set(params["b01"])
          .at[:, H:H + hdim].set(params["b02"]))

    # Layer 1: per-branch hidden weights + fused embedding (zsa / zs) weights.
    w1ha = z((H, H)).at[:hdim, :hdim].set(w1[:hdim])
    w1hb = z((H, H)).at[:hdim, :hdim].set(w4[:hdim])
    w1zsa = (z((zd, 2 * H))
             .at[:, :hdim].set(w1[hdim:hdim + zd])
             .at[:, H:H + hdim].set(w4[hdim:hdim + zd]))
    w1zs = (z((zd, 2 * H))
            .at[:, :hdim].set(w1[hdim + zd:])
            .at[:, H:H + hdim].set(w4[hdim + zd:]))
    b1 = (z((1, 2 * H))
          .at[:, :hdim].set(params["b1"])
          .at[:, H:H + hdim].set(params["b4"]))

    # Layer 2: per-branch dense (H,H).
    w2a = z((H, H)).at[:hdim, :hdim].set(params["w2"])
    w2b = z((H, H)).at[:hdim, :hdim].set(params["w5"])
    b2 = (z((1, 2 * H))
          .at[:, :hdim].set(params["b2"])
          .at[:, H:H + hdim].set(params["b5"]))

    # Heads: (H, 128) lane slabs; real q in lane 0, rest zero.
    w3a = z((H, NQ)).at[:hdim, 0:1].set(params["w3"])
    w3b = z((H, NQ)).at[:hdim, 0:1].set(params["w6"])
    b3a = z((1, NQ)).at[:, 0:1].set(params["b3"])
    b3b = z((1, NQ)).at[:, 0:1].set(params["b6"])

    return {
        "w0": w0.astype(bf), "b0": b0,
        "w1ha": w1ha.astype(bf), "w1hb": w1hb.astype(bf),
        "w1zsa": w1zsa.astype(bf), "w1zs": w1zs.astype(bf), "b1": b1,
        "w2a": w2a.astype(bf), "w2b": w2b.astype(bf), "b2": b2,
        "w3a": w3a.astype(bf), "w3b": w3b.astype(bf),
        "b3a": b3a, "b3b": b3b,
    }


# ---------------------------------------------------------------------------
# Pure-JAX reference (f32, unpacked params) for verification
# ---------------------------------------------------------------------------
def q_critic_reference(state, action, zsa, zs, params):
    sa = jnp.concatenate([state, action], axis=1)
    emb = jnp.concatenate([zsa, zs], axis=1)

    def avg_l1(x, eps=1e-8):
        return x / jnp.maximum(jnp.mean(jnp.abs(x), -1, keepdims=True), eps)

    def elu(x):
        return jnp.where(x > 0, x, jnp.exp(x) - 1.0)

    def branch(w0, b0, w1, b1, w2, b2, w3, b3):
        h = avg_l1(sa @ w0 + b0)
        h = jnp.concatenate([h, emb], axis=1)
        h = elu(h @ w1 + b1)
        h = elu(h @ w2 + b2)
        return h @ w3 + b3

    q1 = branch(params["w01"], params["b01"], params["w1"], params["b1"],
                params["w2"], params["b2"], params["w3"], params["b3"])
    q2 = branch(params["w02"], params["b02"], params["w4"], params["b4"],
                params["w5"], params["b5"], params["w6"], params["b6"])
    return jnp.minimum(q1, q2)


if __name__ == "__main__":
    # Small demo shapes (real TD7 uses hdim=256, zs_dim=256, B>=256; the same
    # packing/grid path covers those shapes unchanged).
    batch, state_dim, action_dim, zs_dim, hdim = 8, 12, 4, 32, 32

    key = jax.random.PRNGKey(0)
    key, ks, ka, kzsa, kzs, kp = jax.random.split(key, 6)
    state = jax.random.normal(ks, (batch, state_dim), jnp.float32)
    action = jax.random.normal(ka, (batch, action_dim), jnp.float32)
    zsa = jax.random.normal(kzsa, (batch, zs_dim), jnp.float32)
    zs = jax.random.normal(kzs, (batch, zs_dim), jnp.float32)

    params = make_params(kp, state_dim, action_dim, zs_dim, hdim)
    packed = jax.block_until_ready(
        pack_params(params, state_dim, action_dim, zs_dim, hdim))

    out = q_critic_forward(state, action, zsa, zs, packed, hdim=hdim)
    out = jax.block_until_ready(out)

    ref = q_critic_reference(state, action, zsa, zs, params)
    assert out.shape == (batch, 1)
    # bf16 matmul operands (f32 accumulation) => loose tolerance vs f32 ref.
    max_err = float(jnp.max(jnp.abs(out - ref)))
    assert jnp.allclose(out, ref, atol=5e-2, rtol=5e-2), (max_err, out, ref)

    print("KERNEL_OK")
</pallas_src>

<mosaic_0001>
module attributes {stable_mosaic.version = 11 : i64} {
  func.func @kernel(%arg0: i32, %arg1: memref<8x16xf32, #tpu.memory_space<vmem>>, %arg2: memref<8x32xf32, #tpu.memory_space<vmem>>, %arg3: memref<8x32xf32, #tpu.memory_space<vmem>>, %arg4: memref<16x256xbf16, #tpu.memory_space<vmem>>, %arg5: memref<1x256xf32, #tpu.memory_space<vmem>>, %arg6: memref<128x128xbf16, #tpu.memory_space<vmem>>, %arg7: memref<128x128xbf16, #tpu.memory_space<vmem>>, %arg8: memref<32x256xbf16, #tpu.memory_space<vmem>>, %arg9: memref<32x256xbf16, #tpu.memory_space<vmem>>, %arg10: memref<1x256xf32, #tpu.memory_space<vmem>>, %arg11: memref<128x128xbf16, #tpu.memory_space<vmem>>, %arg12: memref<128x128xbf16, #tpu.memory_space<vmem>>, %arg13: memref<1x256xf32, #tpu.memory_space<vmem>>, %arg14: memref<128x128xbf16, #tpu.memory_space<vmem>>, %arg15: memref<128x128xbf16, #tpu.memory_space<vmem>>, %arg16: memref<1x128xf32, #tpu.memory_space<vmem>>, %arg17: memref<1x128xf32, #tpu.memory_space<vmem>>, %arg18: memref<8x128xf32, #tpu.memory_space<vmem>>) attributes {dimension_semantics = [#tpu.dimension_semantics<parallel>], iteration_bounds = array<i64: 1>, scalar_prefetch = 0 : i64, scratch_operands = 0 : i64, tpu.core_type = #tpu.core_type<tc>, window_params = [{transform_indices = @transform_0, window_bounds = array<i64: 8, 16>}, {transform_indices = @transform_1, window_bounds = array<i64: 8, 32>}, {transform_indices = @transform_2, window_bounds = array<i64: 8, 32>}, {pipeline_mode = #tpu.pipeline_mode<synchronous>, transform_indices = @transform_3, window_bounds = array<i64: 16, 256>}, {pipeline_mode = #tpu.pipeline_mode<synchronous>, transform_indices = @transform_4, window_bounds = array<i64: 1, 256>}, {pipeline_mode = #tpu.pipeline_mode<synchronous>, transform_indices = @transform_5, window_bounds = array<i64: 128, 128>}, {pipeline_mode = #tpu.pipeline_mode<synchronous>, transform_indices = @transform_6, window_bounds = array<i64: 128, 128>}, {pipeline_mode = #tpu.pipeline_mode<synchronous>, transform_indices = @transform_7, window_bounds = array<i64: 32, 256>}, {pipeline_mode = #tpu.pipeline_mode<synchronous>, transform_indices = @transform_8, window_bounds = array<i64: 32, 256>}, {pipeline_mode = #tpu.pipeline_mode<synchronous>, transform_indices = @transform_9, window_bounds = array<i64: 1, 256>}, {pipeline_mode = #tpu.pipeline_mode<synchronous>, transform_indices = @transform_10, window_bounds = array<i64: 128, 128>}, {pipeline_mode = #tpu.pipeline_mode<synchronous>, transform_indices = @transform_11, window_bounds = array<i64: 128, 128>}, {pipeline_mode = #tpu.pipeline_mode<synchronous>, transform_indices = @transform_12, window_bounds = array<i64: 1, 256>}, {pipeline_mode = #tpu.pipeline_mode<synchronous>, transform_indices = @transform_13, window_bounds = array<i64: 128, 128>}, {pipeline_mode = #tpu.pipeline_mode<synchronous>, transform_indices = @transform_14, window_bounds = array<i64: 128, 128>}, {pipeline_mode = #tpu.pipeline_mode<synchronous>, transform_indices = @transform_15, window_bounds = array<i64: 1, 128>}, {pipeline_mode = #tpu.pipeline_mode<synchronous>, transform_indices = @transform_16, window_bounds = array<i64: 1, 128>}, {transform_indices = @transform_17, window_bounds = array<i64: 8, 128>}]} {
    %c0 = arith.constant 0 : index
    %c0_0 = arith.constant 0 : index
    %0 = vector.load %arg1[%c0, %c0_0] : memref<8x16xf32, #tpu.memory_space<vmem>>, vector<8x16xf32>
    %1 = arith.truncf %0 : vector<8x16xf32> to vector<8x16xbf16>
    %c0_1 = arith.constant 0 : index
    %c0_2 = arith.constant 0 : index
    %2 = vector.load %arg2[%c0_1, %c0_2] : memref<8x32xf32, #tpu.memory_space<vmem>>, vector<8x32xf32>
    %3 = arith.truncf %2 : vector<8x32xf32> to vector<8x32xbf16>
    %c0_3 = arith.constant 0 : index
    %c0_4 = arith.constant 0 : index
    %4 = vector.load %arg3[%c0_3, %c0_4] : memref<8x32xf32, #tpu.memory_space<vmem>>, vector<8x32xf32>
    %5 = arith.truncf %4 : vector<8x32xf32> to vector<8x32xbf16>
    %c0_5 = arith.constant 0 : index
    %c0_6 = arith.constant 0 : index
    %6 = vector.load %arg4[%c0_5, %c0_6] : memref<16x256xbf16, #tpu.memory_space<vmem>>, vector<16x256xbf16>
    %cst = arith.constant dense<0.000000e+00> : vector<8x256xf32>
    %7 = tpu.matmul %1, %6, %cst {dimension_numbers = #tpu.dot_dimension_numbers<[1], [0], [0], [1], [0, 0, 1, 1], [], []>} : vector<8x16xbf16>, vector<16x256xbf16>, vector<8x256xf32> -> vector<8x256xf32>
    %c0_7 = arith.constant 0 : index
    %c0_8 = arith.constant 0 : index
    %8 = vector.load %arg5[%c0_7, %c0_8] : memref<1x256xf32, #tpu.memory_space<vmem>>, vector<1x256xf32>
    %9 = vector.broadcast %8 : vector<1x256xf32> to vector<8x256xf32>
    %10 = arith.addf %7, %9 : vector<8x256xf32>
    %11 = vector.extract_strided_slice %10 {offsets = [0, 0], sizes = [8, 128], strides = [1, 1]} : vector<8x256xf32> to vector<8x128xf32>
    %12 = math.absf %11 : vector<8x128xf32>
    %cst_9 = arith.constant dense<0.000000e+00> : vector<8xf32>
    %13 = vector.multi_reduction <add>, %12, %cst_9 [1] : vector<8x128xf32> to vector<8xf32>
    %14 = vector.shape_cast %13 : vector<8xf32> to vector<8x1xf32>
    %cst_10 = arith.constant 3.125000e-02 : f32
    %15 = vector.broadcast %cst_10 : f32 to vector<8x1xf32>
    %16 = arith.mulf %14, %15 : vector<8x1xf32>
    %cst_11 = arith.constant 9.99999993E-9 : f32
    %17 = vector.broadcast %cst_11 : f32 to vector<8x1xf32>
    %18 = arith.maximumf %16, %17 : vector<8x1xf32>
    %cst_12 = arith.constant 1.000000e+00 : f32
    %19 = vector.broadcast %cst_12 : f32 to vector<8x1xf32>
    %20 = arith.divf %19, %18 : vector<8x1xf32>
    %21 = vector.broadcast %20 : vector<8x1xf32> to vector<8x128xf32>
    %22 = arith.mulf %11, %21 : vector<8x128xf32>
    %23 = vector.extract_strided_slice %10 {offsets = [0, 128], sizes = [8, 128], strides = [1, 1]} : vector<8x256xf32> to vector<8x128xf32>
    %24 = math.absf %23 : vector<8x128xf32>
    %cst_13 = arith.constant dense<0.000000e+00> : vector<8xf32>
    %25 = vector.multi_reduction <add>, %24, %cst_13 [1] : vector<8x128xf32> to vector<8xf32>
    %26 = vector.shape_cast %25 : vector<8xf32> to vector<8x1xf32>
    %cst_14 = arith.constant 3.125000e-02 : f32
    %27 = vector.broadcast %cst_14 : f32 to vector<8x1xf32>
    %28 = arith.mulf %26, %27 : vector<8x1xf32>
    %cst_15 = arith.constant 9.99999993E-9 : f32
    %29 = vector.broadcast %cst_15 : f32 to vector<8x1xf32>
    %30 = arith.maximumf %28, %29 : vector<8x1xf32>
    %cst_16 = arith.constant 1.000000e+00 : f32
    %31 = vector.broadcast %cst_16 : f32 to vector<8x1xf32>
    %32 = arith.divf %31, %30 : vector<8x1xf32>
    %33 = vector.broadcast %32 : vector<8x1xf32> to vector<8x128xf32>
    %34 = arith.mulf %23, %33 : vector<8x128xf32>
    %c0_17 = arith.constant 0 : index
    %c0_18 = arith.constant 0 : index
    %35 = vector.load %arg8[%c0_17, %c0_18] : memref<32x256xbf16, #tpu.memory_space<vmem>>, vector<32x256xbf16>
    %cst_19 = arith.constant dense<0.000000e+00> : vector<8x256xf32>
    %36 = tpu.matmul %3, %35, %cst_19 {dimension_numbers = #tpu.dot_dimension_numbers<[1], [0], [0], [1], [0, 0, 1, 1], [], []>} : vector<8x32xbf16>, vector<32x256xbf16>, vector<8x256xf32> -> vector<8x256xf32>
    %c0_20 = arith.constant 0 : index
    %c0_21 = arith.constant 0 : index
    %37 = vector.load %arg9[%c0_20, %c0_21] : memref<32x256xbf16, #tpu.memory_space<vmem>>, vector<32x256xbf16>
    %cst_22 = arith.constant dense<0.000000e+00> : vector<8x256xf32>
    %38 = tpu.matmul %5, %37, %cst_22 {dimension_numbers = #tpu.dot_dimension_numbers<[1], [0], [0], [1], [0, 0, 1, 1], [], []>} : vector<8x32xbf16>, vector<32x256xbf16>, vector<8x256xf32> -> vector<8x256xf32>
    %39 = arith.addf %36, %38 : vector<8x256xf32>
    %c0_23 = arith.constant 0 : index
    %c0_24 = arith.constant 0 : index
    %40 = vector.load %arg10[%c0_23, %c0_24] : memref<1x256xf32, #tpu.memory_space<vmem>>, vector<1x256xf32>
    %41 = vector.broadcast %40 : vector<1x256xf32> to vector<8x256xf32>
    %42 = arith.addf %39, %41 : vector<8x256xf32>
    %43 = arith.truncf %22 : vector<8x128xf32> to vector<8x128xbf16>
    %c0_25 = arith.constant 0 : index
    %c0_26 = arith.constant 0 : index
    %44 = vector.load %arg6[%c0_25, %c0_26] : memref<128x128xbf16, #tpu.memory_space<vmem>>, vector<128x128xbf16>
    %cst_27 = arith.constant dense<0.000000e+00> : vector<8x128xf32>
    %45 = tpu.matmul %43, %44, %cst_27 {dimension_numbers = #tpu.dot_dimension_numbers<[1], [0], [0], [1], [0, 0, 1, 1], [], []>} : vector<8x128xbf16>, vector<128x128xbf16>, vector<8x128xf32> -> vector<8x128xf32>
    %46 = vector.extract_strided_slice %42 {offsets = [0, 0], sizes = [8, 128], strides = [1, 1]} : vector<8x256xf32> to vector<8x128xf32>
    %47 = arith.addf %45, %46 : vector<8x128xf32>
    %cst_28 = arith.constant 0.000000e+00 : f32
    %48 = vector.broadcast %cst_28 : f32 to vector<8x128xf32>
    %49 = arith.cmpf ogt, %47, %48 : vector<8x128xf32>
    %50 = math.exp %47 : vector<8x128xf32>
    %cst_29 = arith.constant 1.000000e+00 : f32
    %51 = vector.broadcast %cst_29 : f32 to vector<8x128xf32>
    %52 = arith.subf %50, %51 : vector<8x128xf32>
    %53 = arith.select %49, %47, %52 : vector<8x128xi1>, vector<8x128xf32>
    %54 = arith.truncf %34 : vector<8x128xf32> to vector<8x128xbf16>
    %c0_30 = arith.constant 0 : index
    %c0_31 = arith.constant 0 : index
    %55 = vector.load %arg7[%c0_30, %c0_31] : memref<128x128xbf16, #tpu.memory_space<vmem>>, vector<128x128xbf16>
    %cst_32 = arith.constant dense<0.000000e+00> : vector<8x128xf32>
    %56 = tpu.matmul %54, %55, %cst_32 {dimension_numbers = #tpu.dot_dimension_numbers<[1], [0], [0], [1], [0, 0, 1, 1], [], []>} : vector<8x128xbf16>, vector<128x128xbf16>, vector<8x128xf32> -> vector<8x128xf32>
    %57 = vector.extract_strided_slice %42 {offsets = [0, 128], sizes = [8, 128], strides = [1, 1]} : vector<8x256xf32> to vector<8x128xf32>
    %58 = arith.addf %56, %57 : vector<8x128xf32>
    %cst_33 = arith.constant 0.000000e+00 : f32
    %59 = vector.broadcast %cst_33 : f32 to vector<8x128xf32>
    %60 = arith.cmpf ogt, %58, %59 : vector<8x128xf32>
    %61 = math.exp %58 : vector<8x128xf32>
    %cst_34 = arith.constant 1.000000e+00 : f32
    %62 = vector.broadcast %cst_34 : f32 to vector<8x128xf32>
    %63 = arith.subf %61, %62 : vector<8x128xf32>
    %64 = arith.select %60, %58, %63 : vector<8x128xi1>, vector<8x128xf32>
    %65 = arith.truncf %53 : vector<8x128xf32> to vector<8x128xbf16>
    %c0_35 = arith.constant 0 : index
    %c0_36 = arith.constant 0 : index
    %66 = vector.load %arg11[%c0_35, %c0_36] : memref<128x128xbf16, #tpu.memory_space<vmem>>, vector<128x128xbf16>
    %cst_37 = arith.constant dense<0.000000e+00> : vector<8x128xf32>
    %67 = tpu.matmul %65, %66, %cst_37 {dimension_numbers = #tpu.dot_dimension_numbers<[1], [0], [0], [1], [0, 0, 1, 1], [], []>} : vector<8x128xbf16>, vector<128x128xbf16>, vector<8x128xf32> -> vector<8x128xf32>
    %c0_38 = arith.constant 0 : index
    %c0_39 = arith.constant 0 : index
    %68 = vector.load %arg13[%c0_38, %c0_39] : memref<1x256xf32, #tpu.memory_space<vmem>>, vector<1x128xf32>
    %69 = vector.broadcast %68 : vector<1x128xf32> to vector<8x128xf32>
    %70 = arith.addf %67, %69 : vector<8x128xf32>
    %cst_40 = arith.constant 0.000000e+00 : f32
    %71 = vector.broadcast %cst_40 : f32 to vector<8x128xf32>
    %72 = arith.cmpf ogt, %70, %71 : vector<8x128xf32>
    %73 = math.exp %70 : vector<8x128xf32>
    %cst_41 = arith.constant 1.000000e+00 : f32
    %74 = vector.broadcast %cst_41 : f32 to vector<8x128xf32>
    %75 = arith.subf %73, %74 : vector<8x128xf32>
    %76 = arith.select %72, %70, %75 : vector<8x128xi1>, vector<8x128xf32>
    %77 = arith.truncf %64 : vector<8x128xf32> to vector<8x128xbf16>
    %c0_42 = arith.constant 0 : index
    %c0_43 = arith.constant 0 : index
    %78 = vector.load %arg12[%c0_42, %c0_43] : memref<128x128xbf16, #tpu.memory_space<vmem>>, vector<128x128xbf16>
    %cst_44 = arith.constant dense<0.000000e+00> : vector<8x128xf32>
    %79 = tpu.matmul %77, %78, %cst_44 {dimension_numbers = #tpu.dot_dimension_numbers<[1], [0], [0], [1], [0, 0, 1, 1], [], []>} : vector<8x128xbf16>, vector<128x128xbf16>, vector<8x128xf32> -> vector<8x128xf32>
    %c0_45 = arith.constant 0 : index
    %c128 = arith.constant 128 : index
    %80 = vector.load %arg13[%c0_45, %c128] : memref<1x256xf32, #tpu.memory_space<vmem>>, vector<1x128xf32>
    %81 = vector.broadcast %80 : vector<1x128xf32> to vector<8x128xf32>
    %82 = arith.addf %79, %81 : vector<8x128xf32>
    %cst_46 = arith.constant 0.000000e+00 : f32
    %83 = vector.broadcast %cst_46 : f32 to vector<8x128xf32>
    %84 = arith.cmpf ogt, %82, %83 : vector<8x128xf32>
    %85 = math.exp %82 : vector<8x128xf32>
    %cst_47 = arith.constant 1.000000e+00 : f32
    %86 = vector.broadcast %cst_47 : f32 to vector<8x128xf32>
    %87 = arith.subf %85, %86 : vector<8x128xf32>
    %88 = arith.select %84, %82, %87 : vector<8x128xi1>, vector<8x128xf32>
    %89 = arith.truncf %76 : vector<8x128xf32> to vector<8x128xbf16>
    %c0_48 = arith.constant 0 : index
    %c0_49 = arith.constant 0 : index
    %90 = vector.load %arg14[%c0_48, %c0_49] : memref<128x128xbf16, #tpu.memory_space<vmem>>, vector<128x128xbf16>
    %cst_50 = arith.constant dense<0.000000e+00> : vector<8x128xf32>
    %91 = tpu.matmul %89, %90, %cst_50 {dimension_numbers = #tpu.dot_dimension_numbers<[1], [0], [0], [1], [0, 0, 1, 1], [], []>} : vector<8x128xbf16>, vector<128x128xbf16>, vector<8x128xf32> -> vector<8x128xf32>
    %c0_51 = arith.constant 0 : index
    %c0_52 = arith.constant 0 : index
    %92 = vector.load %arg16[%c0_51, %c0_52] : memref<1x128xf32, #tpu.memory_space<vmem>>, vector<1x128xf32>
    %93 = vector.broadcast %92 : vector<1x128xf32> to vector<8x128xf32>
    %94 = arith.addf %91, %93 : vector<8x128xf32>
    %95 = arith.truncf %88 : vector<8x128xf32> to vector<8x128xbf16>
    %c0_53 = arith.constant 0 : index
    %c0_54 = arith.constant 0 : index
    %96 = vector.load %arg15[%c0_53, %c0_54] : memref<128x128xbf16, #tpu.memory_space<vmem>>, vector<128x128xbf16>
    %cst_55 = arith.constant dense<0.000000e+00> : vector<8x128xf32>
    %97 = tpu.matmul %95, %96, %cst_55 {dimension_numbers = #tpu.dot_dimension_numbers<[1], [0], [0], [1], [0, 0, 1, 1], [], []>} : vector<8x128xbf16>, vector<128x128xbf16>, vector<8x128xf32> -> vector<8x128xf32>
    %c0_56 = arith.constant 0 : index
    %c0_57 = arith.constant 0 : index
    %98 = vector.load %arg17[%c0_56, %c0_57] : memref<1x128xf32, #tpu.memory_space<vmem>>, vector<1x128xf32>
    %99 = vector.broadcast %98 : vector<1x128xf32> to vector<8x128xf32>
    %100 = arith.addf %97, %99 : vector<8x128xf32>
    %101 = arith.minimumf %94, %100 : vector<8x128xf32>
    %c0_58 = arith.constant 0 : index
    %c0_59 = arith.constant 0 : index
    %102 = vector.load %arg18[%c0_58, %c0_59] : memref<8x128xf32, #tpu.memory_space<vmem>>, vector<8x128xf32>
    tpu.vector_store %arg18[%c0_58, %c0_59], %101 {strides = array<i32>} : memref<8x128xf32, #tpu.memory_space<vmem>>, vector<8x128xf32>,
    return
  }
  func.func @transform_0(%arg0: i32) -> (i32, i32) {
    %c0_i32 = arith.constant 0 : i32
    %c0_i32_0 = arith.constant 0 : i32
    return %arg0, %c0_i32 : i32, i32
  }
  func.func @transform_1(%arg0: i32) -> (i32, i32) {
    %c0_i32 = arith.constant 0 : i32
    %c0_i32_0 = arith.constant 0 : i32
    return %arg0, %c0_i32 : i32, i32
  }
  func.func @transform_2(%arg0: i32) -> (i32, i32) {
    %c0_i32 = arith.constant 0 : i32
    %c0_i32_0 = arith.constant 0 : i32
    return %arg0, %c0_i32 : i32, i32
  }
  func.func @transform_3(%arg0: i32) -> (i32, i32) {
    %c0_i32 = arith.constant 0 : i32
    %c0_i32_0 = arith.constant 0 : i32
    %c0_i32_1 = arith.constant 0 : i32
    return %c0_i32, %c0_i32_0 : i32, i32
  }
  func.func @transform_4(%arg0: i32) -> (i32, i32) {
    %c0_i32 = arith.constant 0 : i32
    %c0_i32_0 = arith.constant 0 : i32
    %c0_i32_1 = arith.constant 0 : i32
    return %c0_i32, %c0_i32_0 : i32, i32
  }
  func.func @transform_5(%arg0: i32) -> (i32, i32) {
    %c0_i32 = arith.constant 0 : i32
    %c0_i32_0 = arith.constant 0 : i32
    %c0_i32_1 = arith.constant 0 : i32
    return %c0_i32, %c0_i32_0 : i32, i32
  }
  func.func @transform_6(%arg0: i32) -> (i32, i32) {
    %c0_i32 = arith.constant 0 : i32
    %c0_i32_0 = arith.constant 0 : i32
    %c0_i32_1 = arith.constant 0 : i32
    return %c0_i32, %c0_i32_0 : i32, i32
  }
  func.func @transform_7(%arg0: i32) -> (i32, i32) {
    %c0_i32 = arith.constant 0 : i32
    %c0_i32_0 = arith.constant 0 : i32
    %c0_i32_1 = arith.constant 0 : i32
    return %c0_i32, %c0_i32_0 : i32, i32
  }
  func.func @transform_8(%arg0: i32) -> (i32, i32) {
    %c0_i32 = arith.constant 0 : i32
    %c0_i32_0 = arith.constant 0 : i32
    %c0_i32_1 = arith.constant 0 : i32
    return %c0_i32, %c0_i32_0 : i32, i32
  }
  func.func @transform_9(%arg0: i32) -> (i32, i32) {
    %c0_i32 = arith.constant 0 : i32
    %c0_i32_0 = arith.constant 0 : i32
    %c0_i32_1 = arith.constant 0 : i32
    return %c0_i32, %c0_i32_0 : i32, i32
  }
  func.func @transform_10(%arg0: i32) -> (i32, i32) {
    %c0_i32 = arith.constant 0 : i32
    %c0_i32_0 = arith.constant 0 : i32
    %c0_i32_1 = arith.constant 0 : i32
    return %c0_i32, %c0_i32_0 : i32, i32
  }
  func.func @transform_11(%arg0: i32) -> (i32, i32) {
    %c0_i32 = arith.constant 0 : i32
    %c0_i32_0 = arith.constant 0 : i32
    %c0_i32_1 = arith.constant 0 : i32
    return %c0_i32, %c0_i32_0 : i32, i32
  }
  func.func @transform_12(%arg0: i32) -> (i32, i32) {
    %c0_i32 = arith.constant 0 : i32
    %c0_i32_0 = arith.constant 0 : i32
    %c0_i32_1 = arith.constant 0 : i32
    return %c0_i32, %c0_i32_0 : i32, i32
  }
  func.func @transform_13(%arg0: i32) -> (i32, i32) {
    %c0_i32 = arith.constant 0 : i32
    %c0_i32_0 = arith.constant 0 : i32
    %c0_i32_1 = arith.constant 0 : i32
    return %c0_i32, %c0_i32_0 : i32, i32
  }
  func.func @transform_14(%arg0: i32) -> (i32, i32) {
    %c0_i32 = arith.constant 0 : i32
    %c0_i32_0 = arith.constant 0 : i32
    %c0_i32_1 = arith.constant 0 : i32
    return %c0_i32, %c0_i32_0 : i32, i32
  }
  func.func @transform_15(%arg0: i32) -> (i32, i32) {
    %c0_i32 = arith.constant 0 : i32
    %c0_i32_0 = arith.constant 0 : i32
    %c0_i32_1 = arith.constant 0 : i32
    return %c0_i32, %c0_i32_0 : i32, i32
  }
  func.func @transform_16(%arg0: i32) -> (i32, i32) {
    %c0_i32 = arith.constant 0 : i32
    %c0_i32_0 = arith.constant 0 : i32
    %c0_i32_1 = arith.constant 0 : i32
    return %c0_i32, %c0_i32_0 : i32, i32
  }
  func.func @transform_17(%arg0: i32) -> (i32, i32) {
    %c0_i32 = arith.constant 0 : i32
    %c0_i32_0 = arith.constant 0 : i32
    return %arg0, %c0_i32 : i32, i32
  }
}

</mosaic_0001>

<bundles_post_ra>
// kernel: q_critic_forward.1
= control target key start
LH: loop header
LB: loop body
LE: loop exit
PB: predicated region body
PF: predicated region fallthrough
CT: control target
= control target key end

     0   :  { %s1681_s0 = inlined_call_operand.vmem [shape: f32[8,16], index: 0, kind: input, shape index: {}]   ;;  %s1682_s1 = inlined_call_operand.vmem [shape: f32[8,32], index: 1, kind: input, shape index: {}]   ;;  %s1683_s2 = inlined_call_operand.hbm [shape: f32[8,32], index: 2, kind: input, shape index: {}]   ;;  %s1684_s3 = inlined_call_operand.vmem [shape: bf16[16,256], index: 3, kind: input, shape index: {}]   ;;  %s1685_s4 = inlined_call_operand.vmem [shape: f32[1,256], index: 4, kind: input, shape index: {}]   ;;  %s1686_s5 = inlined_call_operand.hbm [shape: bf16[128,128], index: 5, kind: input, shape index: {}]   ;;  %s1687_s6 = inlined_call_operand.hbm [shape: bf16[128,128], index: 6, kind: input, shape index: {}]   ;;  %s1688_s7 = inlined_call_operand.hbm [shape: bf16[32,256], index: 7, kind: input, shape index: {}]   ;;  %s1689_s8 = inlined_call_operand.hbm [shape: bf16[32,256], index: 8, kind: input, shape index: {}]   ;;  %s1690_s9 = inlined_call_operand.vmem [shape: f32[1,256], index: 9, kind: input, shape index: {}]   ;;  %s1691_s10 = inlined_call_operand.hbm [shape: bf16[128,128], index: 10, kind: input, shape index: {}]   ;;  %s1692_s11 = inlined_call_operand.hbm [shape: bf16[128,128], index: 11, kind: input, shape index: {}]   ;;  %s1693_s12 = inlined_call_operand.vmem [shape: f32[1,256], index: 12, kind: input, shape index: {}]   ;;  %s1694_s13 = inlined_call_operand.hbm [shape: bf16[128,128], index: 13, kind: input, shape index: {}]   ;;  %s1695_s14 = inlined_call_operand.hbm [shape: bf16[128,128], index: 14, kind: input, shape index: {}]   ;;  %s1696_s15 = inlined_call_operand.vmem [shape: f32[1,128], index: 15, kind: input, shape index: {}]   ;;  %s1697_s16 = inlined_call_operand.vmem [shape: f32[1,128], index: 16, kind: input, shape index: {}]   ;;  %s1698_s17 = inlined_call_operand.vmem [shape: f32[8,128], index: 17, kind: output, shape index: {}]  }
   0x1   :  { %1699 = sst [smem:[#allocation21_spill]] %s1681_s0 }
   0x2   :  { %1700 = sst [smem:[#allocation22_spill]] %s1682_s1 }
   0x3   :  { %22 = vsyncpa [#allocation3], 0 }
   0x4   :  { %23 = vsyncpa [#allocation5], 0 }
   0x5   :  { %24 = vsyncpa [#allocation8], 0 }
   0x6   :  { %25 = vsyncpa [#allocation11], 0  ;;  %s50_s26 = sshll.u32 %s1686_s5, 4  ;;  %s51_s26 = int_to_ptr.hbm [resolvable:$true] %s50_s26 }
   0x7   :  { %26 = vsyncpa [#allocation14], 0  ;;  %s1476_s27 = smov [#allocation4]   ;;  %s76_s30 = sshll.u32 %s1688_s7, 4  ;;  %s77_s30 = int_to_ptr.hbm [resolvable:$true] %s76_s30 }
   0x8   :  { %s52_s28 = sshll.u32 %s1476_s27, 4  ;;  %s1477_s18 = smov 64   ;;  %s53_s28 = int_to_ptr.vmem [resolvable:$true] %s52_s28 }
   0x9   :  { %s1478_s19 = smov 4   ;;  %s1479_s1 = smov [#allocation7]  }
   0xa   :  { %58 = dma.hbm_to_vmem [thread:$0]  %s51_s26, 1024, %s53_s28, [#allocation5], %s1477_s18, %s1477_s18, %s1478_s19  }
   0xb   :  { %s78_s20 = sshll.u32 %s1479_s1, 4  ;;  %s1480_s5 = smov 128   ;;  %s79_s20 = int_to_ptr.vmem [resolvable:$true] %s78_s20 }
   0xc   :  { %s1481_s21 = smov 8   ;;  %s104_s7 = sshll.u32 %s1691_s10, 4  ;;  %s105_s7 = int_to_ptr.hbm [resolvable:$true] %s104_s7 }
   0xd   :  { %84 = dma.hbm_to_vmem [thread:$0]  %s77_s30, 512, %s79_s20, [#allocation8], %s1480_s5, %s1480_s5, %s1481_s21  }
   0xe   :  { %s1482_s24 = smov [#allocation10]   ;;  %s132_s28 = sshll.u32 %s1694_s13, 4  ;;  %s133_s28 = int_to_ptr.hbm [resolvable:$true] %s132_s28 }
   0xf   :  { %s106_s25 = sshll.u32 %s1482_s24, 4  ;;  %s1483_s29 = smov [#allocation13]   ;;  %s107_s25 = int_to_ptr.vmem [resolvable:$true] %s106_s25 }
  0x10   :  { %112 = dma.hbm_to_vmem [thread:$0]  %s105_s7, 1024, %s107_s25, [#allocation11], %s1477_s18, %s1477_s18, %s1478_s19  }
  0x11   :  { %s134_s0 = sshll.u32 %s1483_s29, 4  ;;  %s36_s20 = sshll.u32 %s1683_s2, 4  ;;  %s135_s0 = int_to_ptr.vmem [resolvable:$true] %s134_s0  ;;  %s37_s20 = int_to_ptr.hbm [resolvable:$true] %s36_s20 }
  0x12   :  { %140 = dma.hbm_to_vmem [thread:$0]  %s133_s28, 1024, %s135_s0, [#allocation14], %s1477_s18, %s1477_s18, %s1478_s19  }
  0x13   :  { %s63_s13 = sshll.u32 %s1687_s6, 4  ;;  %s1484_s23 = smov [#allocation2]   ;;  %s64_s13 = int_to_ptr.hbm [resolvable:$true] %s63_s13 }
  0x14   :  { %s38_s24 = sshll.u32 %s1484_s23, 4  ;;  %s1485_s7 = smov [#allocation6]   ;;  %s39_s24 = int_to_ptr.vmem [resolvable:$true] %s38_s24 }
  0x15   :  { %41 = dma.hbm_to_vmem [thread:$0]  %s37_s20, 128, %s39_s24, [#allocation3]  }
  0x16   :  { %s65_s25 = sshll.u32 %s1485_s7, 4  ;;  %s89_s2 = sshll.u32 %s1689_s8, 4  ;;  %s66_s25 = int_to_ptr.vmem [resolvable:$true] %s65_s25  ;;  %s90_s2 = int_to_ptr.hbm [resolvable:$true] %s89_s2 }
  0x17   :  { %71 = dma.hbm_to_vmem [thread:$0]  %s64_s13, 1024, %s66_s25, [#allocation5], %s1477_s18, %s1477_s18, %s1478_s19  }
  0x18   :  { %s117_s6 = sshll.u32 %s1692_s11, 4  ;;  %s1486_s0 = smov [#allocation9]   ;;  %s118_s6 = int_to_ptr.hbm [resolvable:$true] %s117_s6 }
  0x19   :  { %s91_s30 = sshll.u32 %s1486_s0, 4  ;;  %s1487_s1 = smov [#allocation12]   ;;  %s92_s30 = int_to_ptr.vmem [resolvable:$true] %s91_s30 }
  0x1a   :  { %97 = dma.hbm_to_vmem [thread:$0]  %s90_s2, 512, %s92_s30, [#allocation8], %s1480_s5, %s1480_s5, %s1481_s21  }
  0x1b   :  { %s119_s8 = sshll.u32 %s1487_s1, 4  ;;  %s145_s22 = sshll.u32 %s1695_s14, 4  ;;  %s120_s8 = int_to_ptr.vmem [resolvable:$true] %s119_s8  ;;  %s146_s22 = int_to_ptr.hbm [resolvable:$true] %s145_s22 }
  0x1c   :  { %125 = dma.hbm_to_vmem [thread:$0]  %s118_s6, 1024, %s120_s8, [#allocation11], %s1477_s18, %s1477_s18, %s1478_s19  }
  0x1d   :  { %s1488_s11 = smov [#allocation15]  }
  0x1e   :  { %s147_s13 = sshll.u32 %s1488_s11, 4  ;;  %s148_s13 = int_to_ptr.vmem [resolvable:$true] %s147_s13 }
  0x1f   :  { %153 = dma.hbm_to_vmem [thread:$0]  %s146_s22, 1024, %s148_s13, [#allocation14], %s1477_s18, %s1477_s18, %s1478_s19  }
  0x20   :  { %1466 = dma.done.wait [#allocation3], 128  }
  0x21   :  { %1467 = vsyncadd [#allocation3], 4294967168 }
  0x22   :  { %1468 = dma.done.wait [#allocation5], 2048  }
  0x23   :  { %1469 = vsyncadd [#allocation5], 4294965248 }
  0x24   :  { %1470 = dma.done.wait [#allocation8], 1024  }
  0x25   :  { %1471 = vsyncadd [#allocation8], 4294966272 }
  0x26   :  { %1472 = dma.done.wait [#allocation11], 2048  }
  0x27   :  { %1473 = vsyncadd [#allocation11], 4294965248 }
  0x28   :  { %1474 = dma.done.wait [#allocation14], 2048  }
  0x29   :  { %1475 = vsyncadd [#allocation14], 4294965248  ;;  %v923_v0 = vld [vmem:[%s1684_s3] sm:$0xf]  ;;  %v1164_v1 = vld [vmem:[%s1684_s3 + $0x4] sm:$0xf0] }
  0x2a   :  { %v1163_v2 = vld [vmem:[%s1684_s3 + $0x4] sm:$0xf]  ;;  %v924_v3 = vor.u32 %v1164_v1, %v923_v0  ;;  %v925_v4 = vld [vmem:[%s1684_s3 + $0x8] sm:$0xf0]  ;;  %s1701_s26 = sld [smem:[#allocation21_spill]]  ;;  %vm219_vm0 = vcmask 130048  }
  0x2b   :  { %v928_v6 = vor.u32 %v1163_v2, %v925_v4  ;;  %v1180_v8 = vld [vmem:[#allocation4 + $0x38] sm:$0xff]  ;;  %v941_v9 = vld [vmem:[#allocation9 + $0x10] sm:$0xf]  ;;  %v1171_v12 = vld [vmem:[#allocation9 + $0x14] sm:$0xf]  ;;  %vm319_vm1 = vcmask 261120  }
  0x2c   :  { %230 = vmatpush.bf16.msra.mxu0 %v924_v3  ;;  %v1172_v10 = vld [vmem:[#allocation9 + $0x14] sm:$0xf0]  ;;  %v943_v13 = vld [vmem:[#allocation9 + $0x18] sm:$0xf0]  ;;  %471 = vmatpush.bf16.msra.mxu2 %v1180_v8  ;;  %v1179_v15 = vld [vmem:[#allocation4 + $0x30] sm:$0xff]  ;;  %s1702_s29 = sld [smem:[#allocation22_spill]] }
  0x2d   :  { %243 = vmatpush.bf16.msra.mxu1 %v928_v6  ;;  %v942_v11 = vor.u32 %v1172_v10, %v941_v9  ;;  %v946_v14 = vor.u32 %v1171_v12, %v943_v13  ;;  %v203_v16 = vld [vmem:[%s1685_s4] sm:$0x3]  ;;  %v933_v27 = vld [vmem:[#allocation9] sm:$0xf]  ;;  %v1170_v28 = vld [vmem:[#allocation9 + $0x4] sm:$0xf0] }
  0x2e   :  { %v205_v17 = vperm.slane %v203_v16, 0  ;;  %v206_v20 = vperm.slane %v203_v16, 1  ;;  %v1169_v29 = vld [vmem:[#allocation9 + $0x4] sm:$0xf]  ;;  %v934_v30 = vor.u32 %v1170_v28, %v933_v27  ;;  %v935_v31 = vld [vmem:[#allocation9 + $0x8] sm:$0xf0] }
  0x2f   :  { %v938_v32 = vor.u32 %v1169_v29, %v935_v31  ;;  %v1178_v33 = vld [vmem:[#allocation4 + $0x28] sm:$0xff]  ;;  %v1188_v34 = vld [vmem:[#allocation6 + $0x38] sm:$0xff]  ;;  %v1177_v37 = vld [vmem:[#allocation4 + $0x20] sm:$0xff] }
  0x30   :  { %v195_v5 = vld [vmem:[%s1701_s26] sm:$0xff]  ;;  %329 = vmatpush.bf16.msrb.mxu0 %v942_v11  ;;  %472 = vmatpush.bf16.msra.mxu2 %v1179_v15  ;;  %v1187_v38 = vld [vmem:[#allocation6 + $0x30] sm:$0xff]  ;;  %v1186_v40 = vld [vmem:[#allocation6 + $0x28] sm:$0xff] }
  0x31   :  { %v196_v7 = vpack.c.bf16 %v195_v5, %v195_v5  ;;  %342 = vmatpush.bf16.msrb.mxu1 %v946_v14  ;;  %v199_v35 = vld [vmem:[#allocation2] sm:$0xff]  ;;  %554 = vmatpush.bf16.msra.mxu3 %v1188_v34  ;;  %v959_v41 = vld [vmem:[#allocation7 + $0x10] sm:$0xf]  ;;  %v1167_v43 = vld [vmem:[#allocation7 + $0x14] sm:$0xf] }
  0x32   :  { %v200_v36 = vpack.c.bf16 %v199_v35, %v199_v35  ;;  %v1176_v39 = vld [vmem:[#allocation4 + $0x18] sm:$0xff]  ;;  %v1175_v47 = vld [vmem:[#allocation4 + $0x10] sm:$0xff]  ;;  %v1185_v48 = vld [vmem:[#allocation6 + $0x20] sm:$0xff] }
  0x33   :  { %929 = vmatmul.msk.bf16.vlgmr.msra.gmra.mxu0 %vm219_vm0, %v196_v7  ;;  %930 = vmatmul.msk.bf16.vlgmr.msra.gmra.mxu1 %vm219_vm0, %v196_v7  ;;  %v1168_v42 = vld [vmem:[#allocation7 + $0x14] sm:$0xf0]  ;;  %v961_v45 = vld [vmem:[#allocation7 + $0x18] sm:$0xf0]  ;;  %v951_v49 = vld [vmem:[#allocation7] sm:$0xf] }
  0x34   :  { %330 = vmatpush.bf16.msrb.mxu0 %v934_v30  ;;  %473 = vmatpush.bf16.msra.mxu2 %v1178_v33  ;;  %v960_v44 = vor.u32 %v1168_v42, %v959_v41  ;;  %v964_v46 = vor.u32 %v1167_v43, %v961_v45  ;;  %v1166_v50 = vld [vmem:[#allocation7 + $0x4] sm:$0xf0]  ;;  %v1165_v51 = vld [vmem:[#allocation7 + $0x4] sm:$0xf]  ;;  %v953_v53 = vld [vmem:[#allocation7 + $0x8] sm:$0xf0] }
  0x35   :  { %343 = vmatpush.bf16.msrb.mxu1 %v938_v32  ;;  %555 = vmatpush.bf16.msra.mxu3 %v1187_v38  ;;  %v952_v52 = vor.u32 %v1166_v50, %v951_v49  ;;  %v956_v54 = vor.u32 %v1165_v51, %v953_v53  ;;  %v1174_v55 = vld [vmem:[#allocation4 + $0x8] sm:$0xff]  ;;  %v1184_v56 = vld [vmem:[#allocation6 + $0x18] sm:$0xff]  ;;  %v1173_v59 = vld [vmem:[#allocation4] sm:$0xff] }
  0x36   :  { %v197_v57 = vld [vmem:[%s1702_s29] sm:$0xff]  ;;  %v1183_v60 = vld [vmem:[#allocation6 + $0x10] sm:$0xff]  ;;  %v1182_v61 = vld [vmem:[#allocation6 + $0x8] sm:$0xff] }
  0x37   :  { %v198_v58 = vpack.c.bf16 %v197_v57, %v197_v57  ;;  %v1181_v62 = vld [vmem:[#allocation6] sm:$0xff]  ;;  %v1196_v31 = vld [vmem:[#allocation10 + $0x38] sm:$0xff]  ;;  %v1194_v33 = vld [vmem:[#allocation10 + $0x28] sm:$0xff] }
  0x38   :  { %474 = vmatpush.bf16.msra.mxu2 %v1177_v37  ;;  %378 = vmatpush.bf16.msra.mxu0 %v960_v44  ;;  %v1204_v32 = vld [vmem:[#allocation12 + $0x38] sm:$0xff]  ;;  %v1203_v34 = vld [vmem:[#allocation12 + $0x30] sm:$0xff]  ;;  %v1193_v35 = vld [vmem:[#allocation10 + $0x20] sm:$0xff] }
  0x39   :  { %556 = vmatpush.bf16.msra.mxu3 %v1186_v40  ;;  %391 = vmatpush.bf16.msra.mxu1 %v964_v46  ;;  %v1192_v43 = vld [vmem:[#allocation10 + $0x18] sm:$0xff]  ;;  %v1202_v44 = vld [vmem:[#allocation12 + $0x28] sm:$0xff]  ;;  %v1191_v45 = vld [vmem:[#allocation10 + $0x10] sm:$0xff] }
  0x3a   :  { %v1201_v46 = vld [vmem:[#allocation12 + $0x20] sm:$0xff]  ;;  %v1199_v50 = vld [vmem:[#allocation12 + $0x10] sm:$0xff]  ;;  %v1198_v51 = vld [vmem:[#allocation12 + $0x8] sm:$0xff] }
  0x3b   :  { %v1189_v49 = vld [vmem:[#allocation10] sm:$0xff]  ;;  %v398_v53 = vld [vmem:[%s1690_s9] sm:$0x3] }
  0x3c   :  { %475 = vmatpush.bf16.msra.mxu2 %v1176_v39  ;;  %379 = vmatpush.bf16.msra.mxu0 %v952_v52  ;;  %v1197_v52 = vld [vmem:[#allocation12] sm:$0xff]  ;;  %v400_v57 = vperm.slane %v398_v53, 0 }
  0x3d   :  { %557 = vmatpush.bf16.msra.mxu3 %v1185_v48  ;;  %392 = vmatpush.bf16.msra.mxu1 %v956_v54  ;;  %v1200_v48 = vld [vmem:[#allocation12 + $0x18] sm:$0xff] }
  0x3e   :  { %v1212_v54 = vld [vmem:[#allocation13 + $0x38] sm:$0xff] }
  0x40   :  { %476 = vmatpush.bf16.msra.mxu2 %v1175_v47  ;;  %v1190_v47 = vld [vmem:[#allocation10 + $0x8] sm:$0xff] }
  0x41   :  { %558 = vmatpush.bf16.msra.mxu3 %v1184_v56 }
  0x43   :  { %947 = vmatmul.msk.bf16.vlgmr.msrb.gmra.mxu0 %vm319_vm1, %v200_v36  ;;  %948 = vmatmul.msk.bf16.vlgmr.msrb.gmra.mxu1 %vm319_vm1, %v200_v36 }
  0x44   :  { %477 = vmatpush.bf16.msra.mxu2 %v1174_v55  ;;  %641 = vmatpush.bf16.msrb.mxu0 %v1196_v31  ;;  %v1220_v55 = vld [vmem:[#allocation15 + $0x38] sm:$0xff] }
  0x45   :  { %559 = vmatpush.bf16.msra.mxu3 %v1183_v60  ;;  %728 = vmatpush.bf16.msrb.mxu1 %v1204_v32 }
  0x48   :  { %478 = vmatpush.bf16.msra.mxu2 %v1173_v59  ;;  %v1219_v59 = vld [vmem:[#allocation15 + $0x30] sm:$0xff] }
  0x49   :  { %560 = vmatpush.bf16.msra.mxu3 %v1182_v61  ;;  %729 = vmatpush.bf16.msrb.mxu1 %v1203_v34  ;;  %v1210_v61 = vld [vmem:[#allocation13 + $0x28] sm:$0xff] }
  0x4c   :  { %815 = vmatpush.bf16.msrb.mxu2 %v1212_v54 }
  0x4d   :  { %561 = vmatpush.bf16.msra.mxu3 %v1181_v62  ;;  %730 = vmatpush.bf16.msrb.mxu1 %v1202_v44 }
  0x51   :  { %731 = vmatpush.bf16.msrb.mxu1 %v1201_v46  ;;  %897 = vmatpush.bf16.msrb.mxu3 %v1220_v55 }
  0x53   :  { %965 = vmatmul.msk.bf16.vlgmr.msra.gmra.mxu0 %vm319_vm1, %v198_v58  ;;  %966 = vmatmul.msk.bf16.vlgmr.msra.gmra.mxu1 %vm319_vm1, %v198_v58  ;;  %v1211_v58 = vld [vmem:[#allocation13 + $0x30] sm:$0xff] }
  0x54   :  { %816 = vmatpush.bf16.msrb.mxu2 %v1211_v58 }
  0x55   :  { %732 = vmatpush.bf16.msrb.mxu1 %v1200_v48  ;;  %898 = vmatpush.bf16.msrb.mxu3 %v1219_v59  ;;  %v1237_v48 = vld [vmem:[%s1697_s16] ss:$0 sm:$0xff] }
  0x58   :  { %817 = vmatpush.bf16.msrb.mxu2 %v1210_v61 }
  0x59   :  { %733 = vmatpush.bf16.msrb.mxu1 %v1199_v50 }
  0x5d   :  { %734 = vmatpush.bf16.msrb.mxu1 %v1198_v51 }
  0x61   :  { %735 = vmatpush.bf16.msrb.mxu1 %v1197_v52 }
  0xb0   :  { %v232_v18 = vpop.f32.mrf.mxu0  ;;  %v245_v21 = vpop.f32.mrf.mxu1 }
  0xb1   :  { %v1648_v19 = vadd.f32 %v232_v18, %v205_v17  ;;  %v1651_v23 = vadd.f32 %v245_v21, %v206_v20 }
  0xb3   :  { %v249_v22 = vand.u32 2147483647, %v1648_v19  ;;  %v270_v26 = vand.u32 2147483647, %v1651_v23 }
  0xb5   :  { %250 = vadd.xlane.f32.xlu0 %v249_v22 }
  0xb8   :  { %v234_v24 = vpop.f32.mrf.mxu0  ;;  %v247_v25 = vpop.f32.mrf.mxu1 }
  0xbd   :  { %271 = vadd.xlane.f32.xlu0 %v270_v26 }
  0xc0   :  { %v332_v36 = vpop.f32.mrf.mxu0  ;;  %v345_v37 = vpop.f32.mrf.mxu1 }
  0xc8   :  { %v334_v38 = vpop.f32.mrf.mxu0  ;;  %v347_v39 = vpop.f32.mrf.mxu1 }
  0xd0   :  { %v381_v40 = vpop.f32.mrf.mxu0 }
  0xd1   :  { %v382_v56 = vadd.f32 %v381_v40, %v332_v36 }
  0xd3   :  { %v404_v60 = vadd.f32 %v400_v57, %v382_v56 }
  0xd8   :  { %v383_v41 = vpop.f32.mrf.mxu0 }
 0x128   :  { %v251_v63 = vpop.xlane.xlu0 %250 }
 0x129   :  { %v252_v0 = vmul.f32 0.03125, %v251_v63 }
 0x12b   :  { %v253_v1 = vmax.f32 %v252_v0, 1e-08 }
 0x12d   :  { %1238 = vrcp.f32 %v253_v1  ;;  %v265_v8 = vand.u32 2147483648, %v253_v1  ;;  %v263_v10 = vand.u32 2147483647, %v253_v1  ;;  %vm259_vm3 = vweird.f32 %v253_v1 }
 0x12f   :  { %v266_v13 = vor.u32 1.1754944e-38, %v265_v8  ;;  %vm264_vm5 = vcmp.eq.f32.partialorder %v263_v10, 8.507059e+37 }
 0x130   :  { %v272_v2 = vpop.xlane.xlu0 %271 }
 0x131   :  { %v273_v3 = vmul.f32 0.03125, %v272_v2  ;;  %v401_v2 = vperm.slane %v398_v53, 1 }
 0x133   :  { %v1239_v4 = vpop.eup %1238  ;;  %v274_v5 = vmax.f32 %v273_v3, 1e-08  ;;  %v1209_v3 = vld [vmem:[#allocation13 + $0x20] sm:$0xff] }
 0x134   :  { %v255_v6 = vmul.f32 %v1239_v4, %v253_v1  ;;  %vm260_vm2 = vweird.f32 %v1239_v4  ;;  %818 = vmatpush.bf16.msrb.mxu2 %v1209_v3 }
 0x135   :  { %1240 = vrcp.f32 %v274_v5  ;;  %vm261_vm4 = vmor %vm259_vm3, %vm260_vm2  ;;  %v286_v20 = vand.u32 2147483648, %v274_v5  ;;  %v284_v24 = vand.u32 2147483647, %v274_v5  ;;  %vm280_vm7 = vweird.f32 %v274_v5 }
 0x136   :  { %v256_v7 = vsub.f32 1.0, %v255_v6 }
 0x137   :  { %v287_v26 = vor.u32 1.1754944e-38, %v286_v20  ;;  %vm285_vm9 = vcmp.eq.f32.partialorder %v284_v24, 8.507059e+37  ;;  %v1218_v20 = vld [vmem:[#allocation15 + $0x28] sm:$0xff] }
 0x138   :  { %v257_v9 = vmul.f32 %v1239_v4, %v256_v7  ;;  %899 = vmatpush.bf16.msrb.mxu3 %v1218_v20  ;;  %v1206_v24 = vld [vmem:[#allocation13 + $0x8] sm:$0xff] }
 0x13a   :  { %v258_v11 = vadd.f32 %v1239_v4, %v257_v9 }
 0x13b   :  { %v1241_v12 = vpop.eup %1240 }
 0x13c   :  { %v276_v14 = vmul.f32 %v1241_v12, %v274_v5  ;;  %v262_v15 = vsel %vm261_vm4, %v1239_v4, %v258_v11  ;;  %vm281_vm6 = vweird.f32 %v1241_v12 }
 0x13d   :  { %v267_v16 = vsel %vm264_vm5, %v266_v13, %v262_v15  ;;  %vm282_vm8 = vmor %vm280_vm7, %vm281_vm6 }
 0x13e   :  { %v277_v17 = vsub.f32 1.0, %v276_v14  ;;  %v269_v18 = vmul.f32 %v267_v16, %v1648_v19  ;;  %v1195_v19 = vld [vmem:[#allocation10 + $0x30] sm:$0xff] }
 0x13f   :  { %642 = vmatpush.bf16.msrb.mxu0 %v1195_v19 }
 0x140   :  { %v406_v21 = vpack.c.bf16 %v269_v18, %v269_v18  ;;  %v278_v22 = vmul.f32 %v1241_v12, %v277_v17  ;;  %v1208_v18 = vld [vmem:[#allocation13 + $0x18] sm:$0xff] }
 0x141   :  { %819 = vmatpush.bf16.msrb.mxu2 %v1208_v18 }
 0x142   :  { %479 = vmatmul.bf16.vlgmr.msra.gmra.mxu2 %v406_v21  ;;  %v279_v25 = vadd.f32 %v1241_v12, %v278_v22  ;;  %v1207_v21 = vld [vmem:[#allocation13 + $0x10] sm:$0xff]  ;;  %v1217_v22 = vld [vmem:[#allocation15 + $0x20] sm:$0xff] }
 0x143   :  { %643 = vmatpush.bf16.msrb.mxu0 %v1194_v33  ;;  %900 = vmatpush.bf16.msrb.mxu3 %v1217_v22  ;;  %v1235_v33 = vld [vmem:[%s1693_s12 + $0x1] ss:$0 sm:$0xff] }
 0x144   :  { %v283_v27 = vsel %vm282_vm8, %v1241_v12, %v279_v25  ;;  %v1216_v25 = vld [vmem:[#allocation15 + $0x18] sm:$0xff] }
 0x145   :  { %v288_v28 = vsel %vm285_vm9, %v287_v26, %v283_v27  ;;  %820 = vmatpush.bf16.msrb.mxu2 %v1207_v21  ;;  %v1205_v26 = vld [vmem:[#allocation13] sm:$0xff]  ;;  %v1215_v27 = vld [vmem:[#allocation15 + $0x10] sm:$0xff] }
 0x146   :  { %v290_v29 = vmul.f32 %v288_v28, %v1651_v23  ;;  %v394_v23 = vpop.f32.mrf.mxu1  ;;  %v1214_v28 = vld [vmem:[#allocation15 + $0x8] sm:$0xff] }
 0x147   :  { %644 = vmatpush.bf16.msrb.mxu0 %v1193_v35  ;;  %v395_v0 = vadd.f32 %v394_v23, %v345_v37  ;;  %901 = vmatpush.bf16.msrb.mxu3 %v1216_v25 }
 0x148   :  { %v489_v30 = vpack.c.bf16 %v290_v29, %v290_v29  ;;  %v1213_v29 = vld [vmem:[#allocation15] sm:$0xff] }
 0x149   :  { %v405_v4 = vadd.f32 %v401_v2, %v395_v0  ;;  %821 = vmatpush.bf16.msrb.mxu2 %v1206_v24 }
 0x14a   :  { %562 = vmatmul.bf16.vlgmr.msra.gmra.mxu3 %v489_v30  ;;  %v1234_v30 = vld [vmem:[%s1693_s12] ss:$0 sm:$0xff] }
 0x14b   :  { %645 = vmatpush.bf16.msrb.mxu0 %v1192_v43  ;;  %902 = vmatpush.bf16.msrb.mxu3 %v1215_v27 }
 0x14d   :  { %822 = vmatpush.bf16.msrb.mxu2 %v1205_v26 }
 0x14e   :  { %v396_v42 = vpop.f32.mrf.mxu1 }
 0x14f   :  { %646 = vmatpush.bf16.msrb.mxu0 %v1191_v45  ;;  %903 = vmatpush.bf16.msrb.mxu3 %v1214_v28 }
 0x153   :  { %647 = vmatpush.bf16.msrb.mxu0 %v1190_v47  ;;  %904 = vmatpush.bf16.msrb.mxu3 %v1213_v29  ;;  %v1236_v47 = vld [vmem:[%s1696_s15] ss:$0 sm:$0xff] }
 0x157   :  { %648 = vmatpush.bf16.msrb.mxu0 %v1189_v49 }
 0x1c5   :  { %v480_v62 = vpop.f32.mrf.mxu2 }
 0x1c6   :  { %v481_v63 = vadd.f32 %v480_v62, %v404_v60 }
 0x1c8   :  { %v485_v1 = vmul.f32 1.442695, %v481_v63  ;;  %vm484_vm10 = vcmp.gt.f32.partialorder %v481_v63, 0.0 }
 0x1ca   :  { %1242 = vpow2.f32 %v485_v1 }
 0x1cd   :  { %v482_v5 = vpop.f32.mrf.mxu2  ;;  %v563_v6 = vpop.f32.mrf.mxu3 }
 0x1ce   :  { %v564_v7 = vadd.f32 %v563_v6, %v405_v4 }
 0x1d0   :  { %v1243_v8 = vpop.eup %1242  ;;  %v568_v9 = vmul.f32 1.442695, %v564_v7  ;;  %vm567_vm11 = vcmp.gt.f32.partialorder %v564_v7, 0.0 }
 0x1d1   :  { %v999_v10 = vadd.f32 -1.0, %v1243_v8 }
 0x1d2   :  { %1244 = vpow2.f32 %v568_v9 }
 0x1d3   :  { %v488_v11 = vsel %vm484_vm10, %v481_v63, %v999_v10 }
 0x1d4   :  { %v572_v12 = vpack.c.bf16 %v488_v11, %v488_v11 }
 0x1d5   :  { %v565_v13 = vpop.f32.mrf.mxu3 }
 0x1d6   :  { %649 = vmatmul.bf16.vlgmr.msrb.gmra.mxu0 %v572_v12 }
 0x1d8   :  { %v1245_v14 = vpop.eup %1244 }
 0x1d9   :  { %v1032_v15 = vadd.f32 -1.0, %v1245_v14 }
 0x1db   :  { %v571_v16 = vsel %vm567_vm11, %v564_v7, %v1032_v15 }
 0x1dc   :  { %v659_v17 = vpack.c.bf16 %v571_v16, %v571_v16 }
 0x1de   :  { %736 = vmatmul.bf16.vlgmr.msrb.gmra.mxu1 %v659_v17 }
 0x253   :  { %v650_v31 = vpop.f32.mrf.mxu0 }
 0x254   :  { %v651_v19 = vadd.f32 %v1234_v30, %v650_v31 }
 0x256   :  { %v655_v32 = vmul.f32 1.442695, %v651_v19  ;;  %vm654_vm12 = vcmp.gt.f32.partialorder %v651_v19, 0.0 }
 0x258   :  { %1246 = vpow2.f32 %v655_v32 }
 0x25b   :  { %v652_v34 = vpop.f32.mrf.mxu0  ;;  %v737_v35 = vpop.f32.mrf.mxu1 }
 0x25c   :  { %v738_v36 = vadd.f32 %v1235_v33, %v737_v35 }
 0x25e   :  { %v1247_v37 = vpop.eup %1246  ;;  %v742_v38 = vmul.f32 1.442695, %v738_v36  ;;  %vm741_vm13 = vcmp.gt.f32.partialorder %v738_v36, 0.0 }
 0x25f   :  { %v1065_v39 = vadd.f32 -1.0, %v1247_v37 }
 0x260   :  { %1248 = vpow2.f32 %v742_v38 }
 0x261   :  { %v658_v40 = vsel %vm654_vm12, %v651_v19, %v1065_v39 }
 0x262   :  { %v746_v23 = vpack.c.bf16 %v658_v40, %v658_v40 }
 0x263   :  { %v739_v41 = vpop.f32.mrf.mxu1 }
 0x264   :  { %823 = vmatmul.bf16.vlgmr.msrb.gmra.mxu2 %v746_v23 }
 0x266   :  { %v1249_v42 = vpop.eup %1248 }
 0x267   :  { %v1098_v43 = vadd.f32 -1.0, %v1249_v42 }
 0x269   :  { %v745_v44 = vsel %vm741_vm13, %v738_v36, %v1098_v43 }
 0x26a   :  { %v828_v45 = vpack.c.bf16 %v745_v44, %v745_v44 }
 0x26c   :  { %905 = vmatmul.bf16.vlgmr.msrb.gmra.mxu3 %v828_v45 }
 0x2e7   :  { %v824_v46 = vpop.f32.mrf.mxu2 }
 0x2e8   :  { %v825_v51 = vadd.f32 %v1236_v47, %v824_v46 }
 0x2ef   :  { %v826_v49 = vpop.f32.mrf.mxu2  ;;  %v906_v50 = vpop.f32.mrf.mxu3 }
 0x2f0   :  { %v907_v52 = vadd.f32 %v1237_v48, %v906_v50 }
 0x2f2   :  { %v910_v53 = vmin.f32 %v825_v51, %v907_v52 }
 0x2f4   :  { %911 = vst [vmem:[%s1698_s17] sm:$0xff] %v910_v53 }
 0x2f7   :  { %v908_v54 = vpop.f32.mrf.mxu3 }
 0x2f8   :  { %916 = vsyncpa [#allocation3], 1 }
 0x2f9   :  { %917 = vsyncpa [#allocation5], 1 }
 0x2fa   :  { %918 = vsyncpa [#allocation8], 1 }
 0x2fb   :  { %919 = vsyncpa [#allocation11], 1 }
 0x2fc   :  { %920 = vsyncpa [#allocation14], 1 }

</bundles_post_ra>
